<compile_context>
chip_gen: v6e
topology: v6e:2x2x1
jax: 0.10.0
libtpu: 0.0.40
codegen_flags: <defaults>
</compile_context>

<pallas_src>
import math

import jax
import jax.numpy as jnp
from jax.experimental import pallas as pl
from jax.experimental.pallas import tpu as pltpu


def _cdiv(a, b):
    return -(-a // b)


def _rdown(x, m):
    return (x // m) * m


def _rup(x, m):
    return _cdiv(x, m) * m


def _tpu_config():
    """Per-generation block byte budget, scoped-VMEM request and core count."""
    kind = ""
    try:
        kind = jax.devices()[0].device_kind.lower()
    except Exception:
        pass
    if "v7" in kind:
        # v7x: 2 TensorCores, 64 MiB VMEM/TC, ~3.2 TB/s HBM -> bigger blocks.
        return {"block_bytes": 12 << 20, "vmem_limit": 48 << 20, "num_cores": 2}
    if ("v4" in kind) or ("v5p" in kind):
        # Megacore parts: 2 TensorCores, 128 MiB VMEM.
        return {"block_bytes": 8 << 20, "vmem_limit": 64 << 20, "num_cores": 2}
    # v5e / v6e: single TensorCore, 128 MiB VMEM.
    return {"block_bytes": 8 << 20, "vmem_limit": 64 << 20, "num_cores": 1}


def _choose_tm(M, cap, num_cores):
    """Row tile: multiple of 8 (or full M); only 2-way split on multi-TC parts."""
    if M <= 8:
        return M
    tm = max(8, _rdown(min(M, max(8, cap)), 8))
    if num_cores >= 2 and M >= 16 and _cdiv(M, tm) < num_cores:
        tm = min(tm, max(8, _rup(_cdiv(M, num_cores), 8)))
    return tm


def _accumulate_lanes(x_ref, acc_ref, width, acc_dt):
    """Add the first `width` lanes of the current (TM, TK) block into a
    lane-dense (TM, 128) accumulator.  `width` is a static Python int, so the
    tail (if any) is a static sub-128-lane slice; hot iterations are pure
    128-lane loads + adds."""
    fg = width // 128
    if fg > 0:
        def body(g, carry):
            off = pl.multiple_of(g * 128, 128)
            acc_ref[...] += x_ref[:, pl.ds(off, 128)].astype(acc_dt)
            return carry
        jax.lax.fori_loop(0, fg, body, 0)
    rem = width - fg * 128
    if rem > 0:
        acc_ref[:, :rem] += x_ref[:, fg * 128:fg * 128 + rem].astype(acc_dt)


def _make_reduce_last_kernel(K, TK, nK, acc_dt):
    """Reduce the last (lane) axis of an (M, K) view with a (TM, 128) f32/int32
    accumulator; cross-lane reduce only in the epilogue."""
    tail_w = K - (nK - 1) * TK   # static width of the final reduction block

    def kernel(x_ref, o_ref, acc_ref):
        k = pl.program_id(1)

        @pl.when(k == 0)
        def _init():
            acc_ref[...] = jnp.zeros_like(acc_ref)

        if tail_w == TK:
            _accumulate_lanes(x_ref, acc_ref, TK, acc_dt)
        else:
            last = nK - 1

            @pl.when(k != last)
            def _full():
                _accumulate_lanes(x_ref, acc_ref, TK, acc_dt)

            @pl.when(k == last)
            def _tail():
                _accumulate_lanes(x_ref, acc_ref, tail_w, acc_dt)

        @pl.when(k == nK - 1)
        def _store():
            o_ref[...] = jnp.sum(acc_ref[...], axis=-1,
                                 keepdims=True).astype(o_ref.dtype)

    return kernel


def _make_reduce_last_split_kernel(K, TK, nK, KBh, acc_dt):
    """Split-K variant: grid (C, nM, KBh); each leading-grid index (one
    TensorCore on v7x) produces a partial sum over its half of the reduction
    blocks; halves are added in the wrapper."""
    tail_w = K - (nK - 1) * TK

    def kernel(x_ref, o_ref, acc_ref):
        c = pl.program_id(0)
        k = pl.program_id(2)

        @pl.when(k == 0)
        def _init():
            acc_ref[...] = jnp.zeros_like(acc_ref)

        gk = c * KBh + k            # global reduction-block index (may overrun)
        if tail_w == TK:
            @pl.when(gk < nK)
            def _full():
                _accumulate_lanes(x_ref, acc_ref, TK, acc_dt)
        else:
            @pl.when(gk < nK - 1)
            def _full():
                _accumulate_lanes(x_ref, acc_ref, TK, acc_dt)

            @pl.when(gk == nK - 1)
            def _tail():
                _accumulate_lanes(x_ref, acc_ref, tail_w, acc_dt)

        @pl.when(k == KBh - 1)
        def _store():
            o_ref[...] = jnp.sum(acc_ref[...], axis=-1,
                                 keepdims=True)[None].astype(o_ref.dtype)

    return kernel


def _make_reduce_mid_kernel(R, TR, nR, acc_dt):
    """Reduce the middle axis of an (A, R, B) view; accumulator is already
    lane-dense (TA, TB).  Tail block uses a static slice (no per-step mask)."""
    tail_w = R - (nR - 1) * TR

    def kernel(x_ref, o_ref, acc_ref):
        r = pl.program_id(2)

        @pl.when(r == 0)
        def _init():
            acc_ref[...] = jnp.zeros_like(acc_ref)

        def add(width):
            acc_ref[...] += jnp.sum(x_ref[:, :width, :].astype(acc_dt), axis=1)

        if tail_w == TR:
            add(TR)
        else:
            last = nR - 1

            @pl.when(r != last)
            def _full():
                add(TR)

            @pl.when(r == last)
            def _tail():
                add(tail_w)

        @pl.when(r == nR - 1)
        def _store():
            o_ref[...] = acc_ref[...].astype(o_ref.dtype)

    return kernel


def _sum_last_axis(x2d, cfg, split_k=None):
    M, K = x2d.shape
    dt = x2d.dtype
    acc_dt = jnp.float32 if jnp.issubdtype(dt, jnp.floating) else jnp.int32
    itemsize = jnp.dtype(dt).itemsize
    budget = max(8 * 128, cfg["block_bytes"] // itemsize)   # elements per block
    num_cores = cfg["num_cores"]

    if K <= 128:
        # Small-lane case: whole reduction in one step, simple row-parallel kernel.
        # (Lanes are under-filled for K < 128; folding several output rows into
        #  the lane axis could recover up to ~2x HBM efficiency for these shapes.)
        TM = _choose_tm(M, min(4096, max(8, budget // max(K, 1))), num_cores)

        def kernel(x_ref, o_ref):
            o_ref[...] = jnp.sum(x_ref[...].astype(acc_dt), axis=-1,
                                 keepdims=True).astype(o_ref.dtype)

        return pl.pallas_call(
            kernel,
            out_shape=jax.ShapeDtypeStruct((M, 1), dt),
            grid_spec=pltpu.PrefetchScalarGridSpec(
                num_scalar_prefetch=0,
                grid=(_cdiv(M, TM),),
                in_specs=[pl.BlockSpec((TM, K), lambda i: (i, 0))],
                out_specs=pl.BlockSpec((TM, 1), lambda i: (i, 0)),
            ),
            compiler_params=pltpu.CompilerParams(
                dimension_semantics=("parallel",),
                vmem_limit_bytes=cfg["vmem_limit"],
            ),
        )(x2d)

    # General case: stream the reduction axis, lane-dense (TM, 128) accumulator.
    if M <= 8:
        TM = M
    elif budget // K >= 16:
        TM = _choose_tm(M, min(2048, budget // K), num_cores)
    else:
        TM = _choose_tm(M, 512, num_cores)
    tk = max(128, _rdown(budget // max(TM, 1), 128))
    TK = K if tk >= K else tk
    nM, nK = _cdiv(M, TM), _cdiv(K, TK)

    if split_k is None:
        # v7x: if the parallel axis yields fewer blocks than TensorCores, split
        # the reduction across cores instead of leaving one idle.
        split_k = num_cores >= 2 and nM < num_cores and nK >= 2 * num_cores

    if split_k and nK >= 2:
        C = max(2, num_cores)
        KBh = _cdiv(nK, C)
        partial = pl.pallas_call(
            _make_reduce_last_split_kernel(K, TK, nK, KBh, acc_dt),
            out_shape=jax.ShapeDtypeStruct((C, M, 1), acc_dt),
            grid_spec=pltpu.PrefetchScalarGridSpec(
                num_scalar_prefetch=0,
                grid=(C, nM, KBh),
                in_specs=[pl.BlockSpec(
                    (TM, TK),
                    lambda c, i, k: (i, jnp.minimum(c * KBh + k, nK - 1)))],
                out_specs=pl.BlockSpec((1, TM, 1), lambda c, i, k: (c, i, 0)),
                scratch_shapes=[pltpu.VMEM((TM, 128), acc_dt)],
            ),
            compiler_params=pltpu.CompilerParams(
                dimension_semantics=("parallel", "parallel", "arbitrary"),
                vmem_limit_bytes=cfg["vmem_limit"],
            ),
        )(x2d)
        return jnp.sum(partial, axis=0).astype(dt)

    return pl.pallas_call(
        _make_reduce_last_kernel(K, TK, nK, acc_dt),
        out_shape=jax.ShapeDtypeStruct((M, 1), dt),
        grid_spec=pltpu.PrefetchScalarGridSpec(
            num_scalar_prefetch=0,
            grid=(nM, nK),
            in_specs=[pl.BlockSpec((TM, TK), lambda i, k: (i, k))],
            out_specs=pl.BlockSpec((TM, 1), lambda i, k: (i, 0)),
            scratch_shapes=[pltpu.VMEM((TM, 128), acc_dt)],
        ),
        compiler_params=pltpu.CompilerParams(
            dimension_semantics=("parallel", "arbitrary"),
            vmem_limit_bytes=cfg["vmem_limit"],
        ),
    )(x2d)


def _sum_mid_axis(x3d, cfg):
    A, R, B = x3d.shape
    dt = x3d.dtype
    acc_dt = jnp.float32 if jnp.issubdtype(dt, jnp.floating) else jnp.int32
    itemsize = jnp.dtype(dt).itemsize
    budget = max(8 * 128, cfg["block_bytes"] // itemsize)
    num_cores = cfg["num_cores"]

    # Lane tile: prefer the FULL B extent (long contiguous DMA runs per (a, r)).
    if B <= 128 or B * 8 <= budget:
        TB = B
    else:
        TB = min(_rdown(B, 128), max(128, _rdown(budget // 8, 128)))
    # Reduction tile: spend the remaining byte budget here.
    per_row = max(1, budget // TB)
    if R <= per_row:
        TR = R
    else:
        TR = min(R, max(8, _rdown(per_row, 8)))
    # Leading tile: leftover budget, capped so the accumulator stays small.
    rem = max(1, budget // (TB * TR))
    rem = min(rem, max(1, (2 << 20) // (4 * TB)))
    if A <= rem:
        TA = A
    elif A < 8:
        TA = A
    else:
        TA = max(8, _rdown(rem, 8))
    if num_cores >= 2 and A >= 16 and _cdiv(A, TA) * _cdiv(B, TB) < num_cores:
        TA = min(TA, max(8, _rup(_cdiv(A, num_cores), 8)))
    nR = _cdiv(R, TR)

    return pl.pallas_call(
        _make_reduce_mid_kernel(R, TR, nR, acc_dt),
        out_shape=jax.ShapeDtypeStruct((A, B), dt),
        grid_spec=pltpu.PrefetchScalarGridSpec(
            num_scalar_prefetch=0,
            grid=(_cdiv(A, TA), _cdiv(B, TB), nR),
            in_specs=[pl.BlockSpec((TA, TR, TB), lambda a, b, r: (a, r, b))],
            out_specs=pl.BlockSpec((TA, TB), lambda a, b, r: (a, b)),
            scratch_shapes=[pltpu.VMEM((TA, TB), acc_dt)],
        ),
        compiler_params=pltpu.CompilerParams(
            dimension_semantics=("parallel", "parallel", "arbitrary"),
            vmem_limit_bytes=cfg["vmem_limit"],
        ),
    )(x3d)


def pallas_sum(x, dim=-1):
    """Equivalent of torch.sum(input, dim=dim) (no keepdim)."""
    ndim = x.ndim
    d = dim % ndim
    shape = x.shape
    out_dims = shape[:d] + shape[d + 1:]
    cfg = _tpu_config()

    if d == ndim - 1:
        K = shape[-1]
        M = int(math.prod(out_dims)) if out_dims else 1
        out = _sum_last_axis(x.reshape(M, K), cfg)        # (M, 1)
        return out.reshape(out_dims)

    # Non-last axis: view as (A, R, B) (pure reshape of a contiguous array) and
    # reduce the middle axis; output stays lane-dense on B.
    A = int(math.prod(shape[:d])) if d > 0 else 1
    R = shape[d]
    B = int(math.prod(shape[d + 1:]))
    out = _sum_mid_axis(x.reshape(A, R, B), cfg)          # (A, B)
    return out.reshape(out_dims)


class Sum:
    """JAX/Pallas port of zennit.layer.Sum."""

    def __init__(self, dim=-1):
        self.dim = dim

    def __call__(self, x):
        return pallas_sum(x, self.dim)


if __name__ == "__main__":
    key = jax.random.PRNGKey(0)
    x = jax.random.normal(key, (2, 4, 16, 32), dtype=jnp.float32)

    # 1) last-axis reduction (small-lane path)
    out = jax.block_until_ready(Sum(dim=-1)(x))
    ref = jnp.sum(x, axis=-1)
    assert out.shape == ref.shape, (out.shape, ref.shape)
    assert jnp.allclose(out, ref, atol=1e-5, rtol=1e-5)

    # 2) middle-axis reduction (no-transpose (A, R, B) path)
    out1 = jax.block_until_ready(Sum(dim=1)(x))
    ref1 = jnp.sum(x, axis=1)
    assert out1.shape == ref1.shape
    assert jnp.allclose(out1, ref1, atol=1e-5, rtol=1e-5)

    # 3) leading-axis reduction
    out0 = jax.block_until_ready(Sum(dim=0)(x))
    ref0 = jnp.sum(x, axis=0)
    assert out0.shape == ref0.shape
    assert jnp.allclose(out0, ref0, atol=1e-5, rtol=1e-5)

    # 4) lane-dense accumulator path with in-block partial lane group (K=2500)
    x2 = jax.random.normal(jax.random.PRNGKey(1), (16, 2500), dtype=jnp.float32)
    out2 = jax.block_until_ready(Sum(dim=-1)(x2))
    ref2 = jnp.sum(x2, axis=-1)
    assert out2.shape == ref2.shape
    assert jnp.allclose(out2, ref2, atol=5e-3, rtol=1e-5)

    # 5) multi-step reduction grid with a static tail block (forced small blocks)
    small_cfg = {"block_bytes": 64 * 1024, "vmem_limit": 32 << 20, "num_cores": 1}
    out3 = jax.block_until_ready(_sum_last_axis(x2, small_cfg))
    assert jnp.allclose(out3.reshape(-1), ref2, atol=5e-3, rtol=1e-5)

    # 6) split-K (two partial sums) path, exercised regardless of detected cores
    split_cfg = {"block_bytes": 64 * 1024, "vmem_limit": 32 << 20, "num_cores": 2}
    out4 = jax.block_until_ready(_sum_last_axis(x2, split_cfg, split_k=True))
    assert jnp.allclose(out4.reshape(-1), ref2, atol=5e-3, rtol=1e-5)

    # 7) mid-axis multi-step reduction with a static tail (forced small blocks)
    x5 = jax.random.normal(jax.random.PRNGKey(2), (4, 1000, 136), dtype=jnp.float32)
    out5 = jax.block_until_ready(_sum_mid_axis(x5, small_cfg))
    ref5 = jnp.sum(x5, axis=1)
    assert out5.shape == ref5.shape
    assert jnp.allclose(out5, ref5, atol=5e-3, rtol=1e-5)

    print("KERNEL_OK")
</pallas_src>

<mosaic_0001>
module attributes {stable_mosaic.version = 11 : i64} {
  func.func @kernel(%arg0: i32, %arg1: memref<128x32xf32, #tpu.memory_space<vmem>>, %arg2: memref<128x1xf32, #tpu.memory_space<vmem>>) attributes {dimension_semantics = [#tpu.dimension_semantics<parallel>], iteration_bounds = array<i64: 1>, scalar_prefetch = 0 : i64, scratch_operands = 0 : i64, tpu.core_type = #tpu.core_type<tc>, window_params = [{transform_indices = @transform_0, window_bounds = array<i64: 128, 32>}, {transform_indices = @transform_1, window_bounds = array<i64: 128, 1>}]} {
    %c0 = arith.constant 0 : index
    %c0_0 = arith.constant 0 : index
    %0 = vector.load %arg1[%c0, %c0_0] : memref<128x32xf32, #tpu.memory_space<vmem>>, vector<128x32xf32>
    %cst = arith.constant dense<0.000000e+00> : vector<128xf32>
    %1 = vector.multi_reduction <add>, %0, %cst [1] : vector<128x32xf32> to vector<128xf32>
    %2 = vector.shape_cast %1 : vector<128xf32> to vector<128x1xf32>
    %c0_1 = arith.constant 0 : index
    %c0_2 = arith.constant 0 : index
    %3 = vector.load %arg2[%c0_1, %c0_2] : memref<128x1xf32, #tpu.memory_space<vmem>>, vector<128x1xf32>
    tpu.vector_store %arg2[%c0_1, %c0_2], %2 {strides = array<i32>} : memref<128x1xf32, #tpu.memory_space<vmem>>, vector<128x1xf32>,
    return
  }
  func.func @transform_0(%arg0: i32) -> (i32, i32) {
    %c0_i32 = arith.constant 0 : i32
    %c0_i32_0 = arith.constant 0 : i32
    return %arg0, %c0_i32 : i32, i32
  }
  func.func @transform_1(%arg0: i32) -> (i32, i32) {
    %c0_i32 = arith.constant 0 : i32
    %c0_i32_0 = arith.constant 0 : i32
    return %arg0, %c0_i32 : i32, i32
  }
}

</mosaic_0001>

<bundles_post_ra>
// kernel: tpu_custom_call.1
= control target key start
LH: loop header
LB: loop body
LE: loop exit
PB: predicated region body
PF: predicated region fallthrough
CT: control target
= control target key end

     0   :  { %vm24_vm0 = vcmask 261120   ;;  %vm73_vm1 = vcmask 7168   ;;  %s232_s0 = inlined_call_operand.vmem [shape: f32[128,32], index: 0, kind: input, shape index: {}]   ;;  %s233_s1 = inlined_call_operand.vmem [shape: f32[128,1], index: 1, kind: output, shape index: {}]  }
   0x1   :  { %v10_v0 = vld [vmem:[%s232_s0 + $0x10] sm:$0xff]  ;;  %v8_v1 = vld [vmem:[%s232_s0] sm:$0xff]  ;;  %v11_v2 = vld [vmem:[%s232_s0 + $0x18] sm:$0xff] }
   0x2   :  { %v31_v3 = vsel %vm24_vm0, %v10_v0, 0.0  ;;  %v25_v4 = vsel %vm24_vm0, %v8_v1, 0.0  ;;  %v9_v5 = vld [vmem:[%s232_s0 + $0x8] sm:$0xff]  ;;  %v34_v6 = vsel %vm24_vm0, %v11_v2, 0.0  ;;  %v12_v9 = vld [vmem:[%s232_s0 + $0x20] sm:$0xff]  ;;  %v15_v12 = vld [vmem:[%s232_s0 + $0x38] sm:$0xff] }
   0x3   :  { %32 = vadd.xlane.f32.xlu1 %v31_v3  ;;  %26 = vadd.xlane.f32.xlu0 %v25_v4  ;;  %v28_v7 = vsel %vm24_vm0, %v9_v5, 0.0  ;;  %v13_v8 = vld [vmem:[%s232_s0 + $0x28] sm:$0xff]  ;;  %v37_v11 = vsel %vm24_vm0, %v12_v9, 0.0  ;;  %v14_v13 = vld [vmem:[%s232_s0 + $0x30] sm:$0xff]  ;;  %v46_v14 = vsel %vm24_vm0, %v15_v12, 0.0  ;;  %v16_v17 = vld [vmem:[%s232_s0 + $0x40] sm:$0xff] }
   0x4   :  { %v40_v10 = vsel %vm24_vm0, %v13_v8, 0.0  ;;  %v43_v15 = vsel %vm24_vm0, %v14_v13, 0.0  ;;  %v17_v16 = vld [vmem:[%s232_s0 + $0x48] sm:$0xff]  ;;  %v49_v19 = vsel %vm24_vm0, %v16_v17, 0.0  ;;  %v19_v20 = vld [vmem:[%s232_s0 + $0x58] sm:$0xff]  ;;  %v18_v21 = vld [vmem:[%s232_s0 + $0x50] sm:$0xff] }
   0x5   :  { %v52_v18 = vsel %vm24_vm0, %v17_v16, 0.0  ;;  %v58_v22 = vsel %vm24_vm0, %v19_v20, 0.0  ;;  %v55_v23 = vsel %vm24_vm0, %v18_v21, 0.0  ;;  %v21_v24 = vld [vmem:[%s232_s0 + $0x68] sm:$0xff]  ;;  %v20_v25 = vld [vmem:[%s232_s0 + $0x60] sm:$0xff]  ;;  %v23_v28 = vld [vmem:[%s232_s0 + $0x78] sm:$0xff] }
   0x6   :  { %v64_v26 = vsel %vm24_vm0, %v21_v24, 0.0  ;;  %v61_v27 = vsel %vm24_vm0, %v20_v25, 0.0  ;;  %v22_v29 = vld [vmem:[%s232_s0 + $0x70] sm:$0xff]  ;;  %v70_v30 = vsel %vm24_vm0, %v23_v28, 0.0 }
   0x7   :  { %35 = vadd.xlane.f32.xlu1 %v34_v6  ;;  %29 = vadd.xlane.f32.xlu0 %v28_v7  ;;  %v67_v31 = vsel %vm24_vm0, %v22_v29, 0.0 }
   0xb   :  { %41 = vadd.xlane.f32.xlu1 %v40_v10  ;;  %38 = vadd.xlane.f32.xlu0 %v37_v11 }
   0xf   :  { %47 = vadd.xlane.f32.xlu1 %v46_v14  ;;  %44 = vadd.xlane.f32.xlu0 %v43_v15 }
  0x13   :  { %53 = vadd.xlane.f32.xlu1 %v52_v18  ;;  %50 = vadd.xlane.f32.xlu0 %v49_v19 }
  0x17   :  { %59 = vadd.xlane.f32.xlu1 %v58_v22  ;;  %56 = vadd.xlane.f32.xlu0 %v55_v23 }
  0x1b   :  { %65 = vadd.xlane.f32.xlu1 %v64_v26  ;;  %62 = vadd.xlane.f32.xlu0 %v61_v27 }
  0x1f   :  { %71 = vadd.xlane.f32.xlu1 %v70_v30  ;;  %68 = vadd.xlane.f32.xlu0 %v67_v31 }
  0x8c   :  { %v33_v32 = vpop.xlane.xlu1 %32  ;;  %v27_v33 = vpop.xlane.xlu0 %26 }
  0x8d   :  { %76 = vst.msk [vmem:[%s233_s1 + $0x10] sm:$0xff] %vm73_vm1, %v33_v32  ;;  %74 = vst.msk [vmem:[%s233_s1] sm:$0xff] %vm73_vm1, %v27_v33 }
  0x90   :  { %v36_v34 = vpop.xlane.xlu1 %35  ;;  %v30_v35 = vpop.xlane.xlu0 %29 }
  0x91   :  { %77 = vst.msk [vmem:[%s233_s1 + $0x18] sm:$0xff] %vm73_vm1, %v36_v34  ;;  %75 = vst.msk [vmem:[%s233_s1 + $0x8] sm:$0xff] %vm73_vm1, %v30_v35 }
  0x94   :  { %v42_v36 = vpop.xlane.xlu1 %41  ;;  %v39_v37 = vpop.xlane.xlu0 %38 }
  0x95   :  { %79 = vst.msk [vmem:[%s233_s1 + $0x28] sm:$0xff] %vm73_vm1, %v42_v36  ;;  %78 = vst.msk [vmem:[%s233_s1 + $0x20] sm:$0xff] %vm73_vm1, %v39_v37 }
  0x98   :  { %v48_v38 = vpop.xlane.xlu1 %47  ;;  %v45_v39 = vpop.xlane.xlu0 %44 }
  0x99   :  { %81 = vst.msk [vmem:[%s233_s1 + $0x38] sm:$0xff] %vm73_vm1, %v48_v38  ;;  %80 = vst.msk [vmem:[%s233_s1 + $0x30] sm:$0xff] %vm73_vm1, %v45_v39 }
  0x9c   :  { %v54_v40 = vpop.xlane.xlu1 %53  ;;  %v51_v41 = vpop.xlane.xlu0 %50 }
  0x9d   :  { %83 = vst.msk [vmem:[%s233_s1 + $0x48] sm:$0xff] %vm73_vm1, %v54_v40  ;;  %82 = vst.msk [vmem:[%s233_s1 + $0x40] sm:$0xff] %vm73_vm1, %v51_v41 }
  0xa0   :  { %v60_v42 = vpop.xlane.xlu1 %59  ;;  %v57_v43 = vpop.xlane.xlu0 %56 }
  0xa1   :  { %85 = vst.msk [vmem:[%s233_s1 + $0x58] sm:$0xff] %vm73_vm1, %v60_v42  ;;  %84 = vst.msk [vmem:[%s233_s1 + $0x50] sm:$0xff] %vm73_vm1, %v57_v43 }
  0xa4   :  { %v66_v44 = vpop.xlane.xlu1 %65  ;;  %v63_v45 = vpop.xlane.xlu0 %62 }
  0xa5   :  { %87 = vst.msk [vmem:[%s233_s1 + $0x68] sm:$0xff] %vm73_vm1, %v66_v44  ;;  %86 = vst.msk [vmem:[%s233_s1 + $0x60] sm:$0xff] %vm73_vm1, %v63_v45 }
  0xa8   :  { %v72_v46 = vpop.xlane.xlu1 %71  ;;  %v69_v47 = vpop.xlane.xlu0 %68 }
  0xa9   :  { %89 = vst.msk [vmem:[%s233_s1 + $0x78] sm:$0xff] %vm73_vm1, %v72_v46  ;;  %88 = vst.msk [vmem:[%s233_s1 + $0x70] sm:$0xff] %vm73_vm1, %v69_v47 }

</bundles_post_ra>
